<compile_context>
chip_gen: v6e
topology: v6e:2x2x1
jax: 0.10.0
libtpu: 0.0.40
codegen_flags: <defaults>
</compile_context>

<pallas_src>
import functools
import math

import jax
import jax.numpy as jnp
from jax.experimental import pallas as pl
from jax.experimental.pallas import tpu as pltpu


def _round_up(x, m):
    return ((x + m - 1) // m) * m


def _erf_poly(x):
    """erf approximation (Abramowitz & Stegun 7.1.26), |err| < 1.5e-7.

    Built only from exp/abs/where/reciprocal so it lowers cleanly on Mosaic.
    """
    a1, a2, a3, a4, a5 = 0.254829592, -0.284496736, 1.421413741, -1.453152027, 1.061405429
    p = 0.3275911
    ax = jnp.abs(x)
    t = pl.reciprocal(1.0 + p * ax, approx=True)          # EUP slot
    poly = ((((a5 * t + a4) * t + a3) * t + a2) * t + a1) * t
    y = 1.0 - poly * jnp.exp(-ax * ax)
    return jnp.where(x < 0, -y, y)


def _gelu_exact(x):
    # torch.nn.GELU() default = erf-based ("exact") GELU, computed in f32.
    return 0.5 * x * (1.0 + _erf_poly(x * (1.0 / math.sqrt(2.0))))


def _dino_head_kernel(x_ref, w1_ref, b1_ref, w2_ref, b2_ref, w3_ref, b3_ref,
                      v_ref, o_ref, z_ref, *, eps):
    """Grid step (i, j): row tile i of the batch, column tile j of out_dim.

    The MLP + L2-normalize are computed once per row tile (j == 0) into the
    persistent VMEM scratch z_ref; every column tile reuses it for the final
    (already weight-normalized) projection.
    """
    mxu_dt = w1_ref.dtype  # bf16 operands feed the MXU; accumulation in f32

    @pl.when(pl.program_id(1) == 0)
    def _compute_bottleneck():
        x = x_ref[...].astype(mxu_dt)                                   # in-kernel cast

        # --- MLP layer 1: Linear + GELU ---
        h = jnp.dot(x, w1_ref[...], preferred_element_type=jnp.float32) + b1_ref[...]
        h = _gelu_exact(h)

        # --- MLP layer 2: Linear + GELU ---
        h = jnp.dot(h.astype(mxu_dt), w2_ref[...],
                    preferred_element_type=jnp.float32) + b2_ref[...]
        h = _gelu_exact(h)

        # --- MLP layer 3: Linear -> bottleneck ---
        h = jnp.dot(h.astype(mxu_dt), w3_ref[...],
                    preferred_element_type=jnp.float32) + b3_ref[...]   # (tb, bneck) f32

        # --- L2 normalize (torch F.normalize p=2): x / max(||x||, eps) ---
        sumsq = jnp.sum(h * h, axis=-1, keepdims=True)
        z_ref[...] = h * jax.lax.rsqrt(jnp.maximum(sumsq, eps * eps))

    # --- weight_norm'd last layer: V already column-normalized in the wrapper ---
    y = jnp.dot(z_ref[...].astype(v_ref.dtype), v_ref[...],
                preferred_element_type=jnp.float32)
    o_ref[...] = y.astype(o_ref.dtype)                                   # lane-dense store


def dino_head_forward(x, w1, b1, w2, b2, w3, b3, v_last, *,
                      block_rows=256, block_cols=2048, eps=1e-12, out_dtype=None):
    """DINOHead forward.

    x:      (B, in_dim)
    w1:     (in_dim, hidden)       b1: (1, hidden)
    w2:     (hidden, hidden)       b2: (1, hidden)
    w3:     (hidden, bottleneck)   b3: (1, bottleneck)
    v_last: (bottleneck, out_dim)  weight_norm 'v' (transposed); weight_g == 1
    """
    B, in_dim = x.shape
    hidden = w1.shape[1]
    bottleneck = w3.shape[1]
    out_dim = v_last.shape[1]
    out_dtype = x.dtype if out_dtype is None else jnp.dtype(out_dtype)
    bf16 = jnp.bfloat16

    # --- fold weight_norm (weight_g == 1) into V once, in f32 (hoisted scale) ---
    v_f32 = v_last.astype(jnp.float32)
    v_hat = v_f32 * jax.lax.rsqrt(jnp.sum(v_f32 * v_f32, axis=0, keepdims=True))

    # --- tile sizes (rows multiple of 16, cols multiple of 128) ---
    block_rows = max(16, (block_rows // 16) * 16)
    tb = min(block_rows, _round_up(B, 16))
    b_pad = _round_up(B, tb)

    block_cols = max(128, (block_cols // 128) * 128)
    out_pad = _round_up(out_dim, 128)
    tn = min(block_cols, out_pad)
    out_pad = _round_up(out_pad, tn)

    # --- explicit padding (no silent whole-batch tiles) ---
    x_p = x if b_pad == B else jnp.pad(x, ((0, b_pad - B), (0, 0)))
    v_p = v_hat if out_pad == out_dim else jnp.pad(v_hat, ((0, 0), (0, out_pad - out_dim)))

    # --- dtypes on the wire: bf16 weights (one-time cast), f32 biases, x untouched ---
    w1_c, w2_c, w3_c, v_c = (w.astype(bf16) for w in (w1, w2, w3, v_p))
    b1_c, b2_c, b3_c = (b.astype(jnp.float32).reshape(1, -1) for b in (b1, b2, b3))

    grid = (b_pad // tb, out_pad // tn)

    const2 = lambda i, j: (0, 0)

    def _const_spec(shape):
        # Constant-index blocks never change across the grid: single-buffer them.
        try:
            return pl.BlockSpec(shape, const2, pipeline_mode=pl.Buffered(1))
        except TypeError:  # older jax without pipeline_mode/Buffered: default buffering
            return pl.BlockSpec(shape, const2)

    # --- explicit scoped-VMEM budget sized from the actual buffers (+headroom) ---
    isz = lambda dt: jnp.dtype(dt).itemsize
    resident = 2 * ((in_dim * hidden + hidden * hidden + hidden * bottleneck) * isz(bf16)
                    + (2 * hidden + bottleneck) * 4)          # x2 in case of dbl-buffer
    pipelined = 2 * (tb * in_dim * isz(x.dtype)
                     + bottleneck * tn * isz(bf16)
                     + tb * tn * isz(out_dtype))
    scratch_bytes = tb * bottleneck * 4
    needed = int(1.25 * (resident + pipelined + scratch_bytes)) + (2 << 20)
    try:
        vmem_cap = int(pltpu.get_tpu_info().vmem_capacity_bytes)
    except Exception:
        vmem_cap = 64 << 20  # conservative (v7x per-TC)
    vmem_limit = int(min(max(needed, 16 << 20), int(0.9 * vmem_cap)))

    kernel = functools.partial(_dino_head_kernel, eps=float(eps))

    out = pl.pallas_call(
        kernel,
        out_shape=jax.ShapeDtypeStruct((b_pad, out_pad), out_dtype),
        grid_spec=pltpu.PrefetchScalarGridSpec(
            num_scalar_prefetch=0,
            grid=grid,                                         # (row tiles, col tiles)
            in_specs=[
                pl.BlockSpec((tb, in_dim), lambda i, j: (i, 0)),   # x rows (pipelined)
                _const_spec((in_dim, hidden)),                     # w1 (resident)
                _const_spec((1, hidden)),                          # b1
                _const_spec((hidden, hidden)),                     # w2
                _const_spec((1, hidden)),                          # b2
                _const_spec((hidden, bottleneck)),                 # w3
                _const_spec((1, bottleneck)),                      # b3
                pl.BlockSpec((bottleneck, tn), lambda i, j: (0, j)),  # V_hat col tile
            ],
            out_specs=pl.BlockSpec((tb, tn), lambda i, j: (i, j)),
            scratch_shapes=[pltpu.VMEM((tb, bottleneck), jnp.float32)],  # persistent z
        ),
        compiler_params=pltpu.CompilerParams(
            dimension_semantics=("parallel", "arbitrary"),
            vmem_limit_bytes=vmem_limit,
        ),
    )(x_p, w1_c, b1_c, w2_c, b2_c, w3_c, b3_c, v_c)

    return out[:B, :out_dim]


def _reference(x, w1, b1, w2, b2, w3, b3, v, eps=1e-12):
    """Pure-JAX f32 reference matching the PyTorch DINOHead forward."""
    gelu = lambda t: 0.5 * t * (1.0 + jax.scipy.special.erf(t / jnp.sqrt(2.0)))
    h = gelu(x @ w1 + b1)
    h = gelu(h @ w2 + b2)
    h = h @ w3 + b3
    h = h / jnp.maximum(jnp.linalg.norm(h, axis=-1, keepdims=True), eps)
    vn = v / jnp.linalg.norm(v, axis=0, keepdims=True)   # weight_norm with g == 1
    return h @ vn


if __name__ == "__main__":
    # Small shapes consistent with a scaled-down DINOHead.
    # B=24 (non-divisible -> exercises batch padding), out_dim=256 with
    # block_cols=128 -> exercises the out_dim grid axis and the j==0 scratch path.
    B, IN_DIM, HIDDEN, BOTTLENECK, OUT_DIM = 24, 64, 128, 64, 256

    key = jax.random.PRNGKey(0)
    ks = jax.random.split(key, 8)
    x = jax.random.normal(ks[0], (B, IN_DIM), dtype=jnp.float32)
    # trunc_normal_(std=0.02)-style weights (stored transposed as (in, out)).
    w1 = jax.random.normal(ks[1], (IN_DIM, HIDDEN), dtype=jnp.float32) * 0.02
    b1 = jax.random.normal(ks[2], (1, HIDDEN), dtype=jnp.float32) * 0.02
    w2 = jax.random.normal(ks[3], (HIDDEN, HIDDEN), dtype=jnp.float32) * 0.02
    b2 = jax.random.normal(ks[4], (1, HIDDEN), dtype=jnp.float32) * 0.02
    w3 = jax.random.normal(ks[5], (HIDDEN, BOTTLENECK), dtype=jnp.float32) * 0.02
    b3 = jax.random.normal(ks[6], (1, BOTTLENECK), dtype=jnp.float32) * 0.02
    v_last = jax.random.normal(ks[7], (BOTTLENECK, OUT_DIM), dtype=jnp.float32) * 0.02

    out = dino_head_forward(x, w1, b1, w2, b2, w3, b3, v_last,
                            block_rows=16, block_cols=128)
    out = jax.block_until_ready(out)

    ref = _reference(x, w1, b1, w2, b2, w3, b3, v_last)
    assert out.shape == (B, OUT_DIM)
    # bf16 MXU operands vs pure-f32 reference: loose-but-safe tolerance.
    assert jnp.allclose(out, ref, atol=2e-2, rtol=2e-2), "mismatch vs reference"

    print("KERNEL_OK")
</pallas_src>

<mosaic_0001>
module attributes {stable_mosaic.version = 11 : i64} {
  func.func @_dino_head_kernel(%arg0: i32, %arg1: i32, %arg2: memref<16x64xf32, #tpu.memory_space<vmem>>, %arg3: memref<64x128xbf16, #tpu.memory_space<vmem>>, %arg4: memref<1x128xf32, #tpu.memory_space<vmem>>, %arg5: memref<128x128xbf16, #tpu.memory_space<vmem>>, %arg6: memref<1x128xf32, #tpu.memory_space<vmem>>, %arg7: memref<128x64xbf16, #tpu.memory_space<vmem>>, %arg8: memref<1x64xf32, #tpu.memory_space<vmem>>, %arg9: memref<64x128xbf16, #tpu.memory_space<vmem>>, %arg10: memref<16x128xf32, #tpu.memory_space<vmem>>, %arg11: memref<16x64xf32, #tpu.memory_space<vmem>>) attributes {dimension_semantics = [#tpu.dimension_semantics<parallel>, #tpu.dimension_semantics<arbitrary>], iteration_bounds = array<i64: 2, 2>, scalar_prefetch = 0 : i64, scratch_operands = 1 : i64, tpu.core_type = #tpu.core_type<tc>, window_params = [{transform_indices = @transform_0, window_bounds = array<i64: 16, 64>}, {pipeline_mode = #tpu.pipeline_mode<synchronous>, transform_indices = @transform_1, window_bounds = array<i64: 64, 128>}, {pipeline_mode = #tpu.pipeline_mode<synchronous>, transform_indices = @transform_2, window_bounds = array<i64: 1, 128>}, {pipeline_mode = #tpu.pipeline_mode<synchronous>, transform_indices = @transform_3, window_bounds = array<i64: 128, 128>}, {pipeline_mode = #tpu.pipeline_mode<synchronous>, transform_indices = @transform_4, window_bounds = array<i64: 1, 128>}, {pipeline_mode = #tpu.pipeline_mode<synchronous>, transform_indices = @transform_5, window_bounds = array<i64: 128, 64>}, {pipeline_mode = #tpu.pipeline_mode<synchronous>, transform_indices = @transform_6, window_bounds = array<i64: 1, 64>}, {transform_indices = @transform_7, window_bounds = array<i64: 64, 128>}, {transform_indices = @transform_8, window_bounds = array<i64: 16, 128>}]} {
    %c0_i32 = arith.constant 0 : i32
    %0 = arith.cmpi eq, %arg1, %c0_i32 : i32
    %1 = arith.extui %0 : i1 to i32
    %c0_i32_0 = arith.constant 0 : i32
    %2 = arith.cmpi ne, %1, %c0_i32_0 : i32
    scf.if %2 {
      %c0_6 = arith.constant 0 : index
      %c0_7 = arith.constant 0 : index
      %8 = vector.load %arg2[%c0_6, %c0_7] : memref<16x64xf32, #tpu.memory_space<vmem>>, vector<16x64xf32>
      %9 = arith.truncf %8 : vector<16x64xf32> to vector<16x64xbf16>
      %c0_8 = arith.constant 0 : index
      %c0_9 = arith.constant 0 : index
      %10 = vector.load %arg3[%c0_8, %c0_9] : memref<64x128xbf16, #tpu.memory_space<vmem>>, vector<64x128xbf16>
      %cst_10 = arith.constant dense<0.000000e+00> : vector<16x128xf32>
      %11 = tpu.matmul %9, %10, %cst_10 {dimension_numbers = #tpu.dot_dimension_numbers<[1], [0], [0], [1], [0, 0, 1, 1], [], []>} : vector<16x64xbf16>, vector<64x128xbf16>, vector<16x128xf32> -> vector<16x128xf32>
      %c0_11 = arith.constant 0 : index
      %c0_12 = arith.constant 0 : index
      %12 = vector.load %arg4[%c0_11, %c0_12] : memref<1x128xf32, #tpu.memory_space<vmem>>, vector<1x128xf32>
      %13 = vector.broadcast %12 : vector<1x128xf32> to vector<16x128xf32>
      %14 = arith.addf %11, %13 : vector<16x128xf32>
      %cst_13 = arith.constant 5.000000e-01 : f32
      %15 = vector.broadcast %cst_13 : f32 to vector<16x128xf32>
      %16 = arith.mulf %15, %14 : vector<16x128xf32>
      %cst_14 = arith.constant 0.707106769 : f32
      %17 = vector.broadcast %cst_14 : f32 to vector<16x128xf32>
      %18 = arith.mulf %14, %17 : vector<16x128xf32>
      %19 = math.absf %18 : vector<16x128xf32>
      %cst_15 = arith.constant 0.327591091 : f32
      %20 = vector.broadcast %cst_15 : f32 to vector<16x128xf32>
      %21 = arith.mulf %20, %19 : vector<16x128xf32>
      %cst_16 = arith.constant 1.000000e+00 : f32
      %22 = vector.broadcast %cst_16 : f32 to vector<16x128xf32>
      %23 = arith.addf %22, %21 : vector<16x128xf32>
      %24 = tpu.reciprocal %23 {approx = true} : vector<16x128xf32> -> vector<16x128xf32>
      %cst_17 = arith.constant 1.06140542 : f32
      %25 = vector.broadcast %cst_17 : f32 to vector<16x128xf32>
      %26 = arith.mulf %25, %24 : vector<16x128xf32>
      %cst_18 = arith.constant -1.45315206 : f32
      %27 = vector.broadcast %cst_18 : f32 to vector<16x128xf32>
      %28 = arith.addf %26, %27 : vector<16x128xf32>
      %29 = arith.mulf %28, %24 : vector<16x128xf32>
      %cst_19 = arith.constant 1.42141378 : f32
      %30 = vector.broadcast %cst_19 : f32 to vector<16x128xf32>
      %31 = arith.addf %29, %30 : vector<16x128xf32>
      %32 = arith.mulf %31, %24 : vector<16x128xf32>
      %cst_20 = arith.constant -0.284496725 : f32
      %33 = vector.broadcast %cst_20 : f32 to vector<16x128xf32>
      %34 = arith.addf %32, %33 : vector<16x128xf32>
      %35 = arith.mulf %34, %24 : vector<16x128xf32>
      %cst_21 = arith.constant 0.254829586 : f32
      %36 = vector.broadcast %cst_21 : f32 to vector<16x128xf32>
      %37 = arith.addf %35, %36 : vector<16x128xf32>
      %38 = arith.mulf %37, %24 : vector<16x128xf32>
      %cst_22 = arith.constant 0.000000e+00 : f32
      %39 = vector.broadcast %cst_22 : f32 to vector<16x128xf32>
      %40 = arith.subf %39, %19 : vector<16x128xf32>
      %41 = arith.mulf %40, %19 : vector<16x128xf32>
      %42 = math.exp %41 : vector<16x128xf32>
      %43 = arith.mulf %38, %42 : vector<16x128xf32>
      %cst_23 = arith.constant 1.000000e+00 : f32
      %44 = vector.broadcast %cst_23 : f32 to vector<16x128xf32>
      %45 = arith.subf %44, %43 : vector<16x128xf32>
      %cst_24 = arith.constant 0.000000e+00 : f32
      %46 = vector.broadcast %cst_24 : f32 to vector<16x128xf32>
      %47 = arith.cmpf olt, %18, %46 : vector<16x128xf32>
      %cst_25 = arith.constant 0.000000e+00 : f32
      %48 = vector.broadcast %cst_25 : f32 to vector<16x128xf32>
      %49 = arith.subf %48, %45 : vector<16x128xf32>
      %50 = arith.select %47, %49, %45 : vector<16x128xi1>, vector<16x128xf32>
      %cst_26 = arith.constant 1.000000e+00 : f32
      %51 = vector.broadcast %cst_26 : f32 to vector<16x128xf32>
      %52 = arith.addf %51, %50 : vector<16x128xf32>
      %53 = arith.mulf %16, %52 : vector<16x128xf32>
      %54 = arith.truncf %53 : vector<16x128xf32> to vector<16x128xbf16>
      %c0_27 = arith.constant 0 : index
      %c0_28 = arith.constant 0 : index
      %55 = vector.load %arg5[%c0_27, %c0_28] : memref<128x128xbf16, #tpu.memory_space<vmem>>, vector<128x128xbf16>
      %cst_29 = arith.constant dense<0.000000e+00> : vector<16x128xf32>
      %56 = tpu.matmul %54, %55, %cst_29 {dimension_numbers = #tpu.dot_dimension_numbers<[1], [0], [0], [1], [0, 0, 1, 1], [], []>} : vector<16x128xbf16>, vector<128x128xbf16>, vector<16x128xf32> -> vector<16x128xf32>
      %c0_30 = arith.constant 0 : index
      %c0_31 = arith.constant 0 : index
      %57 = vector.load %arg6[%c0_30, %c0_31] : memref<1x128xf32, #tpu.memory_space<vmem>>, vector<1x128xf32>
      %58 = vector.broadcast %57 : vector<1x128xf32> to vector<16x128xf32>
      %59 = arith.addf %56, %58 : vector<16x128xf32>
      %cst_32 = arith.constant 5.000000e-01 : f32
      %60 = vector.broadcast %cst_32 : f32 to vector<16x128xf32>
      %61 = arith.mulf %60, %59 : vector<16x128xf32>
      %cst_33 = arith.constant 0.707106769 : f32
      %62 = vector.broadcast %cst_33 : f32 to vector<16x128xf32>
      %63 = arith.mulf %59, %62 : vector<16x128xf32>
      %64 = math.absf %63 : vector<16x128xf32>
      %cst_34 = arith.constant 0.327591091 : f32
      %65 = vector.broadcast %cst_34 : f32 to vector<16x128xf32>
      %66 = arith.mulf %65, %64 : vector<16x128xf32>
      %cst_35 = arith.constant 1.000000e+00 : f32
      %67 = vector.broadcast %cst_35 : f32 to vector<16x128xf32>
      %68 = arith.addf %67, %66 : vector<16x128xf32>
      %69 = tpu.reciprocal %68 {approx = true} : vector<16x128xf32> -> vector<16x128xf32>
      %cst_36 = arith.constant 1.06140542 : f32
      %70 = vector.broadcast %cst_36 : f32 to vector<16x128xf32>
      %71 = arith.mulf %70, %69 : vector<16x128xf32>
      %cst_37 = arith.constant -1.45315206 : f32
      %72 = vector.broadcast %cst_37 : f32 to vector<16x128xf32>
      %73 = arith.addf %71, %72 : vector<16x128xf32>
      %74 = arith.mulf %73, %69 : vector<16x128xf32>
      %cst_38 = arith.constant 1.42141378 : f32
      %75 = vector.broadcast %cst_38 : f32 to vector<16x128xf32>
      %76 = arith.addf %74, %75 : vector<16x128xf32>
      %77 = arith.mulf %76, %69 : vector<16x128xf32>
      %cst_39 = arith.constant -0.284496725 : f32
      %78 = vector.broadcast %cst_39 : f32 to vector<16x128xf32>
      %79 = arith.addf %77, %78 : vector<16x128xf32>
      %80 = arith.mulf %79, %69 : vector<16x128xf32>
      %cst_40 = arith.constant 0.254829586 : f32
      %81 = vector.broadcast %cst_40 : f32 to vector<16x128xf32>
      %82 = arith.addf %80, %81 : vector<16x128xf32>
      %83 = arith.mulf %82, %69 : vector<16x128xf32>
      %cst_41 = arith.constant 0.000000e+00 : f32
      %84 = vector.broadcast %cst_41 : f32 to vector<16x128xf32>
      %85 = arith.subf %84, %64 : vector<16x128xf32>
      %86 = arith.mulf %85, %64 : vector<16x128xf32>
      %87 = math.exp %86 : vector<16x128xf32>
      %88 = arith.mulf %83, %87 : vector<16x128xf32>
      %cst_42 = arith.constant 1.000000e+00 : f32
      %89 = vector.broadcast %cst_42 : f32 to vector<16x128xf32>
      %90 = arith.subf %89, %88 : vector<16x128xf32>
      %cst_43 = arith.constant 0.000000e+00 : f32
      %91 = vector.broadcast %cst_43 : f32 to vector<16x128xf32>
      %92 = arith.cmpf olt, %63, %91 : vector<16x128xf32>
      %cst_44 = arith.constant 0.000000e+00 : f32
      %93 = vector.broadcast %cst_44 : f32 to vector<16x128xf32>
      %94 = arith.subf %93, %90 : vector<16x128xf32>
      %95 = arith.select %92, %94, %90 : vector<16x128xi1>, vector<16x128xf32>
      %cst_45 = arith.constant 1.000000e+00 : f32
      %96 = vector.broadcast %cst_45 : f32 to vector<16x128xf32>
      %97 = arith.addf %96, %95 : vector<16x128xf32>
      %98 = arith.mulf %61, %97 : vector<16x128xf32>
      %99 = arith.truncf %98 : vector<16x128xf32> to vector<16x128xbf16>
      %c0_46 = arith.constant 0 : index
      %c0_47 = arith.constant 0 : index
      %100 = vector.load %arg7[%c0_46, %c0_47] : memref<128x64xbf16, #tpu.memory_space<vmem>>, vector<128x64xbf16>
      %cst_48 = arith.constant dense<0.000000e+00> : vector<16x64xf32>
      %101 = tpu.matmul %99, %100, %cst_48 {dimension_numbers = #tpu.dot_dimension_numbers<[1], [0], [0], [1], [0, 0, 1, 1], [], []>} : vector<16x128xbf16>, vector<128x64xbf16>, vector<16x64xf32> -> vector<16x64xf32>
      %c0_49 = arith.constant 0 : index
      %c0_50 = arith.constant 0 : index
      %102 = vector.load %arg8[%c0_49, %c0_50] : memref<1x64xf32, #tpu.memory_space<vmem>>, vector<1x64xf32>
      %103 = vector.broadcast %102 : vector<1x64xf32> to vector<16x64xf32>
      %104 = arith.addf %101, %103 : vector<16x64xf32>
      %105 = arith.mulf %104, %104 : vector<16x64xf32>
      %cst_51 = arith.constant dense<0.000000e+00> : vector<16xf32>
      %106 = vector.multi_reduction <add>, %105, %cst_51 [1] : vector<16x64xf32> to vector<16xf32>
      %107 = vector.shape_cast %106 : vector<16xf32> to vector<16x1xf32>
      %cst_52 = arith.constant 1.000000e-24 : f32
      %108 = vector.broadcast %cst_52 : f32 to vector<16x1xf32>
      %109 = arith.maximumf %107, %108 : vector<16x1xf32>
      %110 = math.rsqrt %109 : vector<16x1xf32>
      %111 = vector.broadcast %110 : vector<16x1xf32> to vector<16x64xf32>
      %112 = arith.mulf %104, %111 : vector<16x64xf32>
      %c0_53 = arith.constant 0 : index
      %c0_54 = arith.constant 0 : index
      %113 = vector.load %arg11[%c0_53, %c0_54] : memref<16x64xf32, #tpu.memory_space<vmem>>, vector<16x64xf32>
      tpu.vector_store %arg11[%c0_53, %c0_54], %112 {strides = array<i32>} : memref<16x64xf32, #tpu.memory_space<vmem>>, vector<16x64xf32>,
    } else {
    }
    %c0 = arith.constant 0 : index
    %c0_1 = arith.constant 0 : index
    %3 = vector.load %arg11[%c0, %c0_1] : memref<16x64xf32, #tpu.memory_space<vmem>>, vector<16x64xf32>
    %4 = arith.truncf %3 : vector<16x64xf32> to vector<16x64xbf16>
    %c0_2 = arith.constant 0 : index
    %c0_3 = arith.constant 0 : index
    %5 = vector.load %arg9[%c0_2, %c0_3] : memref<64x128xbf16, #tpu.memory_space<vmem>>, vector<64x128xbf16>
    %cst = arith.constant dense<0.000000e+00> : vector<16x128xf32>
    %6 = tpu.matmul %4, %5, %cst {dimension_numbers = #tpu.dot_dimension_numbers<[1], [0], [0], [1], [0, 0, 1, 1], [], []>} : vector<16x64xbf16>, vector<64x128xbf16>, vector<16x128xf32> -> vector<16x128xf32>
    %c0_4 = arith.constant 0 : index
    %c0_5 = arith.constant 0 : index
    %7 = vector.load %arg10[%c0_4, %c0_5] : memref<16x128xf32, #tpu.memory_space<vmem>>, vector<16x128xf32>
    tpu.vector_store %arg10[%c0_4, %c0_5], %6 {strides = array<i32>} : memref<16x128xf32, #tpu.memory_space<vmem>>, vector<16x128xf32>,
    return
  }
  func.func @transform_0(%arg0: i32, %arg1: i32) -> (i32, i32) {
    %c0_i32 = arith.constant 0 : i32
    %c0_i32_0 = arith.constant 0 : i32
    return %arg0, %c0_i32 : i32, i32
  }
  func.func @transform_1(%arg0: i32, %arg1: i32) -> (i32, i32) {
    %c0_i32 = arith.constant 0 : i32
    %c0_i32_0 = arith.constant 0 : i32
    %c0_i32_1 = arith.constant 0 : i32
    return %c0_i32, %c0_i32_0 : i32, i32
  }
  func.func @transform_2(%arg0: i32, %arg1: i32) -> (i32, i32) {
    %c0_i32 = arith.constant 0 : i32
    %c0_i32_0 = arith.constant 0 : i32
    %c0_i32_1 = arith.constant 0 : i32
    return %c0_i32, %c0_i32_0 : i32, i32
  }
  func.func @transform_3(%arg0: i32, %arg1: i32) -> (i32, i32) {
    %c0_i32 = arith.constant 0 : i32
    %c0_i32_0 = arith.constant 0 : i32
    %c0_i32_1 = arith.constant 0 : i32
    return %c0_i32, %c0_i32_0 : i32, i32
  }
  func.func @transform_4(%arg0: i32, %arg1: i32) -> (i32, i32) {
    %c0_i32 = arith.constant 0 : i32
    %c0_i32_0 = arith.constant 0 : i32
    %c0_i32_1 = arith.constant 0 : i32
    return %c0_i32, %c0_i32_0 : i32, i32
  }
  func.func @transform_5(%arg0: i32, %arg1: i32) -> (i32, i32) {
    %c0_i32 = arith.constant 0 : i32
    %c0_i32_0 = arith.constant 0 : i32
    %c0_i32_1 = arith.constant 0 : i32
    return %c0_i32, %c0_i32_0 : i32, i32
  }
  func.func @transform_6(%arg0: i32, %arg1: i32) -> (i32, i32) {
    %c0_i32 = arith.constant 0 : i32
    %c0_i32_0 = arith.constant 0 : i32
    %c0_i32_1 = arith.constant 0 : i32
    return %c0_i32, %c0_i32_0 : i32, i32
  }
  func.func @transform_7(%arg0: i32, %arg1: i32) -> (i32, i32) {
    %c0_i32 = arith.constant 0 : i32
    %c0_i32_0 = arith.constant 0 : i32
    return %c0_i32, %arg1 : i32, i32
  }
  func.func @transform_8(%arg0: i32, %arg1: i32) -> (i32, i32) {
    %c0_i32 = arith.constant 0 : i32
    return %arg0, %arg1 : i32, i32
  }
}

</mosaic_0001>

<bundles_post_ra>
// kernel: tpu_custom_call.1
= control target key start
LH: loop header
LB: loop body
LE: loop exit
PB: predicated region body
PF: predicated region fallthrough
CT: control target
= control target key end

     0   :  { %s1908_s0 = inlined_call_operand.vmem [shape: f32[32,64], index: 0, kind: input, shape index: {}]   ;;  %s1909_s1 = inlined_call_operand.hbm [shape: bf16[64,128], index: 1, kind: input, shape index: {}]   ;;  %s1910_s2 = inlined_call_operand.vmem [shape: f32[1,128], index: 2, kind: input, shape index: {}]   ;;  %s1911_s3 = inlined_call_operand.vmem [shape: bf16[128,128], index: 3, kind: input, shape index: {}]   ;;  %s1912_s4 = inlined_call_operand.vmem [shape: f32[1,128], index: 4, kind: input, shape index: {}]   ;;  %s1913_s5 = inlined_call_operand.vmem [shape: bf16[128,64], index: 5, kind: input, shape index: {}]   ;;  %s1914_s6 = inlined_call_operand.vmem [shape: f32[1,64], index: 6, kind: input, shape index: {}]   ;;  %s1915_s7 = inlined_call_operand.hbm [shape: bf16[64,256], index: 7, kind: input, shape index: {}]   ;;  %s1916_s8 = inlined_call_operand.hbm [shape: f32[32,256], index: 8, kind: output, shape index: {}]  }
   0x1   :  { %1932 = sst [smem:[#allocation18_spill]] %s1909_s1 }
   0x2   :  { %1933 = sst [smem:[#allocation19_spill]] %s1912_s4 }
   0x3   :  { %1934 = sst [smem:[#allocation20_spill]] %s1913_s5 }
   0x4   :  { %1935 = sst [smem:[#allocation21_spill]] %s1914_s6 }
   0x5   :  { %1936 = sst [smem:[#allocation22_spill]] %s1916_s8 }
   0x6   :  { %13 = vsyncpa [#allocation4], 0 }
   0x7   :  { %14 = vsyncpa [#allocation7], 0 }
   0x8   :  { %16 = vsyncpa [#allocation7 + $0x1], 0 }
   0x9   :  { %17 = vsyncpa [#allocation5], 0 }
   0xa   :  { %19 = vsyncpa [#allocation5 + $0x1], 0  ;;  %s1568_s27 = smov 0   ;;  %s1570_s28 = smov 0  }
   0xb   :  { %s1572_s29 = smov 0   ;;  %s1574_s30 = smov 0  }
   0xc   :  { %s1576_s9 = smov 0   ;;  %s1578_s10 = smov 0  }
   0xd   :  { %s1580_s11 = smov 0   ;;  %s1582_s12 = smov 0  }
   0xe   :  { %s1584_s13 = smov 0   ;;  %s1586_s14 = smov 0  }
   0xf   :  { %s1588_s15 = smov 0  }
  0x10 LB: > { %1937 = sst [smem:[#allocation12_spill]] %s1468_s27  ;;  %s1021_s16 = sadd.s32 4294967295, %s1508_s15   ;;  %s1508_s15 = sphi %s1588_s15, %s25_s15   ;;  %s1504_s14 = sphi %s1586_s14, %s1979_s14   ;;  %s1500_s13 = sphi %s1584_s13, %s1970_s13   ;;  %s1496_s12 = sphi %s1582_s12, %s1978_s12   ;;  %s1492_s11 = sphi %s1580_s11, %s1969_s11   ;;  %s1488_s10 = sphi %s1578_s10, %s1977_s10   ;;  %s1484_s9 = sphi %s1576_s9, %s1976_s9   ;;  %s1480_s30 = sphi %s1574_s30, %s1975_s30   ;;  %s1476_s29 = sphi %s1572_s29, %s1974_s29   ;;  %s1472_s28 = sphi %s1570_s28, %s1973_s28   ;;  %s1468_s27 = sphi %s1568_s27, %s1972_s27  }
  0x11   : > { %1938 = sst [smem:[#allocation13_spill]] %s1500_s13  ;;  %s1022_s17 = sadd.s32 4294967294, %s1508_s15  }
  0x12   : > { %1939 = sst [smem:[#allocation14_spill]] %s1508_s15  ;;  %p203_p0 = scmp.ne.s32.totalorder %s1488_s10, %s1484_s9 }
  0x13   : > { %p204_p1 = scmp.eq.s32.totalorder %s1508_s15, 0  ;;  %p209_p2 = scmp.ne.s32.totalorder %s1484_s9, %s1480_s30 }
  0x14   : > { %p1628_p3 = scmp.eq.s32.totalorder %s1021_s16, 0  ;;  %p234_p5 = scmp.ne.s32.totalorder %s1476_s29, %s1472_s28 }
  0x15   : > { %p1633_p4 = por %p204_p1, %p203_p0  ;;  %p235_p7 = scmp.eq.s32.totalorder %s1021_s16, 3 }
  0x16   : > { %p1641_p6 = por %p1628_p3, %p209_p2  ;;  %p240_p8 = scmp.ne.s32.totalorder %s1472_s28, %s1468_s27 }
  0x17   : > { %p241_p9 = scmp.eq.s32.totalorder %s1022_s17, 3  ;;  %p1647_p10 = por %p235_p7, %p234_p5 }
  0x18   : > { %s1942_s22 = scalar_select %p1641_p6, 1, 0 }
  0x19   : > { %s1943_s23 = scalar_select %p1647_p10, 1, 0 }
  0x1a   : > { %p1023_p11 = scmp.ge.s32.totalorder %s1508_s15, 1  ;;  %p1652_p12 = por %p241_p9, %p240_p8 }
  0x1b   : > { %1944 = sst [smem:[#allocation15_spill]] %s1943_s23  ;;  %p248_p13 = scmp.lt.s32.totalorder %s1508_s15, 5 }
  0x1c   : > { %s1945_s24 = scalar_select %p1652_p12, 1, 0 }
  0x1d   : > { %p1657_p0 = pnand %p1023_p11, %p248_p13  ;;  %s1510_s26 = smov [#allocation3]  }
  0x1e   : > { %1946 = sst [smem:[#allocation16_spill]] %s1945_s24  ;;  %s260_s30 = sshll.u32 %s1510_s26, 4  ;;  %s261_s30 = int_to_ptr.vmem [resolvable:$true] %s260_s30 }
  0x1f   : > { %s1947_s25 = scalar_select %p1657_p0, 1, 0 }
  0x20   : > { %p1171_p1 = pneg %p1657_p0  ;;  %p1184_p2 = scmp.lt.s32.totalorder %s1508_s15, 4 }
  0x21   : > { %s1341_s20 = scalar_lea.vmem %s261_s30, 512  ;;  %p1349_p12 = scmp.lt.s32.totalorder %s261_s30, %s261_s30 }
  0x22   : > { %p1666_p5 = pnand %p1171_p1, %p1628_p3  ;;  %p1672_p7 = pnand %p1184_p2, %p1633_p4 }
  0x23   : > { %p1342_p9 = scmp.ne.s32.totalorder %s261_s30, %s1341_s20  ;;  %p1350_p10 = scmp.lt.s32.totalorder %s1341_s20, %s1341_s20 }
  0x24   : > { %p1332_p8 = pneg %p1666_p5 }
  0x25   : > { %p1351_p6 = por %p1350_p10, %p1349_p12 }
  0x26   : > { %p1344_p11 = pnand %p1342_p9, %p1332_p8 }
  0x28   : > { %p1345_p13 = pneg %p1344_p11 }
  0x2a   : > { %p1352_p0 = pnand %p1351_p6, %p1345_p13 }
  0x2c   : > { %1355 = shalt.err (!%p1352_p0)
}
  0x2d   : > { %s1927_s26 = smov 64   ;;  %s1928_s21 = smov 4  }
  0x2e   : > { %s1950_s1 = sld [smem:[#allocation18_spill]]  ;;  %s34_s20 = sadd.s32 1, %s1500_s13 }
  0x2f   : > { %s37_s27 = sadd.s32 1, %s1504_s14  ;;  %p35_p4 = scmp.ge.s32.totalorder %s34_s20, 2 }
  0x30   : > { %s298_s15 = sand.u32 1, %s1488_s10   ;;  %s1027_s23 = sshll.u32 %s1500_s13, 6 }
  0x31   : > { %s1026_s8 = sshll.u32 %s298_s15, 5  ;;  %s1981_s20 = smov (%p35_p4, %s34_s20), 0 }
  0x32   : > { %1951 = sst [smem:[#allocation17_spill]] %s1981_s20  ;;  %s1983_s27 = smov (!%p35_p4, %s37_s27), %s1504_s14 }
  0x33   : > { %s193_s16 = ssub.s32 %s1500_s13, %s1981_s20  ;;  %p39_p6 = scmp.ge.s32.totalorder %s1983_s27, 2 }
  0x34   : > { %1174 = dma.hbm_to_vmem [thread:$0]  (!%p1666_p5), %s1950_s1, 512, %s261_s30, [#allocation4], %s1927_s26, %s1927_s26, %s1928_s21  }
  0x35   : > { %p194_p10 = scmp.eq.s32.totalorder %s193_s16, 0  ;;  %s302_s6 = scalar_lea.vmem [#allocation6], %s1026_s8 }
  0x36   : > { %s308_s18 = sshll.u32 %s302_s6, 4  ;;  %s1985_s27 = smov (%p39_p6, %s1983_s27), 0  ;;  %s309_s18 = int_to_ptr.vmem [resolvable:$true] %s308_s18 }
  0x37   : > { %s1952_s24 = sadd.s32 1, %s1488_s10  ;;  %s219_s26 = ssub.s32 %s1504_s14, %s1985_s27 }
  0x38   : > { %s1700_s30 = scalar_select %p194_p10, %s1488_s10, %s1952_s24  }
  0x39   : > { %s307_s4 = scalar_lea.hbm %s1915_s7, %s1027_s23  ;;  %s221_s5 = sor.u32 %s219_s26, %s193_s16 }
  0x3a   : > { %p222_p12 = scmp.eq.s32.totalorder %s221_s5, 0  ;;  %s299_s20 = scalar_lea.sflag [#allocation7], %s298_s15 }
  0x3b   : > { %p1358_p0 = pneg %p1672_p7  ;;  %s1369_s13 = scalar_lea.vmem %s309_s18, 512 }
  0x3c   : > { %p1370_p1 = scmp.ne.s32.totalorder %s309_s18, %s1369_s13  ;;  %s1513_s6 = smov [#allocation6]  }
  0x3d   : > { %s1374_s8 = sshll.u32 %s1513_s6, 4  ;;  %s1375_s8 = int_to_ptr.vmem [resolvable:$false] %s1374_s8 }
  0x3e   : > { %p1372_p2 = pnand %p1370_p1, %p1358_p0  ;;  %s1376_s24 = scalar_lea.vmem %s1375_s8, 1024 }
  0x3f   : > { %p1377_p8 = scmp.lt.s32.totalorder %s309_s18, %s1375_s8  ;;  %p1378_p9 = scmp.lt.s32.totalorder %s1376_s24, %s1369_s13 }
  0x40   : > { %p1373_p5 = pneg %p1372_p2 }
  0x41   : > { %p1379_p11 = por %p1378_p9, %p1377_p8 }
  0x43   : > { %p1380_p13 = pnand %p1379_p11, %p1373_p5 }
  0x45   : > { %1383 = shalt.err (!%p1380_p13)
}
  0x46   : > { %s1514_s1 = smov 128   ;;  %s1953_s23 = smov 4  }
  0x47   : > { %s1954_s15 = smov 64   ;;  %s1955_s26 = sadd.s32 1, %s1476_s29 }
  0x48   : > { %1178 = dma.hbm_to_vmem [thread:$0]  (!%p1672_p7), %s307_s4, 512, %s309_s18, %s299_s20, %s1514_s1, %s1954_s15, %s1953_s23  }
  0x49   : > { %s1717_s21 = scalar_select %p222_p12, %s1476_s29, %s1955_s26  }
  0x4a   : > { %p1956_p4 = scmp.ne.s32.totalorder %s1947_s25, 0 }
  0x4c   : > { %320 = sbr.rel (%p1956_p4) target bundleno = 1205 (0x4b5), region = 52 }
  0x51   : > { %1455 = dma.done.wait (%p1628_p3), [#allocation4], 512  }
  0x52   : > { %1457 = vsyncadd (%p1628_p3), [#allocation4], 4294966784  ;;  %s326_s13 = sand.u32 1, %s1484_s9   ;;  %p1957_p7 = scmp.ne.s32.totalorder %s1942_s22, 0 }
  0x53   : > { %s1030_s17 = sshll.u32 %s326_s13, 5  ;;  %s327_s16 = scalar_lea.sflag [#allocation7], %s326_s13 }
  0x54   : > { %s1726_s6 = scalar_lea.vmem [#allocation6], %s1030_s17 }
  0x55   : > { %1459 = dma.done.wait (%p1957_p7), %s327_s16, 512  }
  0x56   : > { %1461 = vsyncadd (%p1957_p7), %s327_s16, 4294966784  ;;  %s365_s4 = sand.u32 1, %s1472_s28   ;;  %s1032_s5 = sshll.u32 %s1496_s12, 1 }
  0x57   : > { %s1031_s19 = sshll.u32 %s365_s4, 4  ;;  %p369_p3 = scmp.lt.s32.totalorder %s1032_s5, 3 }
  0x58   : > { %s1739_s24 = scalar_lea.vmem [#allocation8], %s1031_s19  ;;  %p1034_p6 = scmp.ne.s32.totalorder %s1492_s11, 0 }
  0x59   : > { %s1987_s5 = smov (!%p369_p3, %s1032_s5), 3  ;;  %s1958_s17 = sld [smem:[#allocation20_spill]] (!%p1034_p6) }
  0x5a   : > { %s1033_s25 = sshll.u32 %s1987_s5, 3  ;;  %379 = sbr.rel (%p1034_p6) target bundleno = 975 (0x3cf), region = 64 }
  0x5b   : > { %s372_s8 = scalar_lea.vmem %s1908_s0, %s1033_s25  ;;  %s1959_s25 = sld [smem:[#allocation19_spill]] (!%p1034_p6) }
  0x5f   : > { %v1286_v0 = vld [vmem:[#allocation3 + $0x18] sm:$0xff]   ;;  %v1515_v1 = vmov 0.0   ;;  %v1287_v2 = vld [vmem:[#allocation3 + $0x10] sm:$0xff]   ;;  %vm1516_vm0 = vmmov 0   ;;  %v1288_v3 = vld [vmem:[#allocation3 + $0x8] sm:$0xff]   ;;  %vm422_vm1 = vcmask 523264  }
  0x60   : > { %1099 = vmatprep.subr.bf16.mxu0 %v1515_v1  ;;  %1111 = vmatprep.subr.bf16.mxu1 %v1515_v1  ;;  %v1289_v4 = vld [vmem:[#allocation3] sm:$0xff]   ;;  %v380_v5 = vld [vmem:[%s372_s8] sm:$0xff]  ;;  %v381_v6 = vld [vmem:[%s372_s8 + $0x8] sm:$0xff]  ;;  %s1960_s8 = sld [smem:[#allocation21_spill]] }
  0x61   : > { %1100 = vmatpush3.bf16.msra.mxu0 %v1286_v0  ;;  %1107 = vmatprep.mubr.msk.bf16.mxu0 %vm1516_vm0, %v1515_v1  ;;  %v382_v7 = vpack.c.bf16 %v381_v6, %v380_v5  ;;  %v1290_v8 = vld [vmem:[%s1911_s3 + $0x38] sm:$0xff]   ;;  %v1291_v9 = vld [vmem:[%s1911_s3 + $0x30] sm:$0xff]   ;;  %v1292_v10 = vld [vmem:[%s1911_s3 + $0x28] sm:$0xff]  }
  0x62   : > { %1101 = vmatprep.subr.bf16.mxu0 %v1515_v1  ;;  %1127 = vmatprep.mubr.msk.bf16.mxu1 %vm1516_vm0, %v1515_v1  ;;  %v1293_v11 = vld [vmem:[%s1911_s3 + $0x20] sm:$0xff]   ;;  %v1294_v12 = vld [vmem:[%s1911_s3 + $0x18] sm:$0xff]   ;;  %v1295_v13 = vld [vmem:[%s1911_s3 + $0x10] sm:$0xff]  }
  0x63   : > { %1112 = vmatpush3.bf16.msra.mxu1 %v1290_v8  ;;  %v1296_v14 = vld [vmem:[%s1911_s3 + $0x8] sm:$0xff]   ;;  %v1297_v15 = vld [vmem:[%s1911_s3] sm:$0xff]  }
  0x64   : > { %1113 = vmatprep.subr.bf16.mxu1 %v1515_v1  ;;  %v1035_v16 = vld [vmem:[%s1910_s2] ss:$0 sm:$0xff] }
  0x65   : > { %1102 = vmatpush3.bf16.msra.mxu0 %v1287_v2 }
  0x66   : > { %1103 = vmatprep.subr.bf16.mxu0 %v1515_v1 }
  0x67   : > { %1114 = vmatpush3.bf16.msra.mxu1 %v1291_v9 }
  0x68   : > { %1115 = vmatprep.subr.bf16.mxu1 %v1515_v1 }
  0x69   : > { %1104 = vmatpush3.bf16.msra.mxu0 %v1288_v3 }
  0x6a   : > { %1105 = vmatprep.subr.bf16.mxu0 %v1515_v1 }
  0x6b   : > { %1116 = vmatpush3.bf16.msra.mxu1 %v1292_v10 }
  0x6c   : > { %1117 = vmatprep.subr.bf16.mxu1 %v1515_v1 }
  0x6d   : > { %1106 = vmatpush3.bf16.msra.mxu0 %v1289_v4 }
  0x6e   : > { %1131 = vmatprep.subr.bf16.mxu0 %v1515_v1 }
  0x6f   : > { %1118 = vmatpush3.bf16.msra.mxu1 %v1293_v11  ;;  %v1298_v11 = vld [vmem:[%s1958_s17 + $0x38] sm:$0xff]  }
  0x70   : > { %1108 = vmatmul.mubr.msk.bf16.vlgmr.msra.gmra.mxu0 %vm422_vm1, %v382_v7  ;;  %1119 = vmatprep.subr.bf16.mxu1 %v1515_v1 }
  0x71   : > { %1147 = vmatprep.mubr.msk.bf16.mxu0 %vm1516_vm0, %v1515_v1  ;;  %1132 = vmatpush3.bf16.msra.mxu0 %v1298_v11 }
  0x72   : > { %1133 = vmatprep.subr.bf16.mxu0 %v1515_v1 }
  0x73   : > { %1120 = vmatpush3.bf16.msra.mxu1 %v1294_v12  ;;  %v1299_v12 = vld [vmem:[%s1958_s17 + $0x30] sm:$0xff]  }
  0x74   : > { %1121 = vmatprep.subr.bf16.mxu1 %v1515_v1 }
  0x75   : > { %1134 = vmatpush3.bf16.msra.mxu0 %v1299_v12 }
  0x76   : > { %1135 = vmatprep.subr.bf16.mxu0 %v1515_v1 }
  0x77   : > { %1122 = vmatpush3.bf16.msra.mxu1 %v1295_v13  ;;  %v1300_v13 = vld [vmem:[%s1958_s17 + $0x28] sm:$0xff]  }
  0x78   : > { %1123 = vmatprep.subr.bf16.mxu1 %v1515_v1 }
  0x79   : > { %1136 = vmatpush3.bf16.msra.mxu0 %v1300_v13  ;;  %v1050_v13 = vld [vmem:[%s1960_s8] ss:$0 sm:$0xff] }
  0x7a   : > { %1137 = vmatprep.subr.bf16.mxu0 %v1515_v1 }
  0x7b   : > { %1124 = vmatpush3.bf16.msra.mxu1 %v1296_v14  ;;  %v1301_v14 = vld [vmem:[%s1958_s17 + $0x20] sm:$0xff]  }
  0x7c   : > { %1125 = vmatprep.subr.bf16.mxu1 %v1515_v1 }
  0x7d   : > { %1138 = vmatpush3.bf16.msra.mxu0 %v1301_v14 }
  0x7e   : > { %1139 = vmatprep.subr.bf16.mxu0 %v1515_v1 }
  0x7f   : > { %1126 = vmatpush3.bf16.msra.mxu1 %v1297_v15  ;;  %v1302_v15 = vld [vmem:[%s1958_s17 + $0x18] sm:$0xff]  }
  0x81   : > { %1140 = vmatpush3.bf16.msra.mxu0 %v1302_v15 }
  0x82   : > { %1141 = vmatprep.subr.bf16.mxu0 %v1515_v1 }
 0x130   : > { %v460_v17 = vpop.f32.mrf.mxu0 }
 0x131   : > { %v461_v18 = vadd.f32 %v1035_v16, %v460_v17  ;;  %v1304_v17 = vld [vmem:[%s1958_s17 + $0x8] sm:$0xff]  }
 0x132   : > { %v1109_v19 = vpop.f32.mrf.mxu0 }
 0x133   : > { %v469_v20 = vmul.f32 0.70710677, %v461_v18  ;;  %v467_v5 = vmul.f32 0.5, %v461_v18  ;;  %v1305_v18 = vld [vmem:[%s1958_s17] sm:$0xff]  }
 0x134   : > { %v463_v21 = vpop.f32.mrf.mxu0  ;;  %v1041_v19 = vld [vmem:[%s1959_s25] ss:$0 sm:$0xff] }
 0x135   : > { %v471_v22 = vand.u32 2147483647, %v469_v20  ;;  %v464_v23 = vadd.f32 %v1035_v16, %v463_v21  ;;  %vm509_vm2 = vcmp.lt.f32.partialorder %v469_v20, 0.0  ;;  %v1303_v16 = vld [vmem:[%s1958_s17 + $0x10] sm:$0xff]  }
 0x136   : > { %v1110_v24 = vpop.f32.mrf.mxu0  ;;  %1142 = vmatpush3.bf16.msra.mxu0 %v1303_v16 }
 0x137   : > { %v473_v25 = vmul.f32 0.3275911, %v471_v22  ;;  %v470_v26 = vmul.f32 0.70710677, %v464_v23  ;;  %v497_v31 = vsub.f32 0.0, %v471_v22  ;;  %v468_v6 = vmul.f32 0.5, %v464_v23  ;;  %1143 = vmatprep.subr.bf16.mxu0 %v1515_v1 }
 0x139   : > { %v475_v27 = vadd.f32 1.0, %v473_v25  ;;  %v472_v28 = vand.u32 2147483647, %v470_v26  ;;  %v499_v32 = vmul.f32 %v497_v31, %v471_v22  ;;  %vm510_vm3 = vcmp.lt.f32.partialorder %v470_v26, 0.0 }
 0x13a   : > { %1144 = vmatpush3.bf16.msra.mxu0 %v1304_v17 }
 0x13b   : > { %1306 = vrcp.f32 %v475_v27  ;;  %v474_v29 = vmul.f32 0.3275911, %v472_v28  ;;  %v498_v33 = vsub.f32 0.0, %v472_v28  ;;  %v501_v36 = vmul.f32 1.442695, %v499_v32  ;;  %1145 = vmatprep.subr.bf16.mxu0 %v1515_v1 }
 0x13d   : > { %v476_v30 = vadd.f32 1.0, %v474_v29  ;;  %v500_v37 = vmul.f32 %v498_v33, %v472_v28 }
 0x13e   : > { %1146 = vmatpush3.bf16.msra.mxu0 %v1305_v18 }
 0x13f   : > { %1308 = vrcp.f32 %v476_v30  ;;  %v503_v42 = vmul.f32 1.442695, %v500_v37 }
 0x140   : > { %1310 = vpow2.f32 %v501_v36 }
 0x141   : > { %1312 = vpow2.f32 %v503_v42 }
 0x148   : > { %v1307_v34 = vpop.eup %1306 }
 0x149   : > { %v479_v35 = vmul.f32 1.0614054, %v1307_v34 }
 0x14b   : > { %v481_v38 = vadd.f32 -1.4531521, %v479_v35 }
 0x14c   : > { %v1309_v39 = vpop.eup %1308 }
 0x14d   : > { %v483_v40 = vmul.f32 %v1307_v34, %v481_v38  ;;  %v480_v41 = vmul.f32 1.0614054, %v1309_v39  ;;  %v1311_v55 = vpop.eup %1310 }
 0x14e   : > { %v1313_v60 = vpop.eup %1312 }
 0x14f   : > { %v485_v43 = vadd.f32 1.4214138, %v483_v40  ;;  %v482_v44 = vadd.f32 -1.4531521, %v480_v41 }
 0x151   : > { %v487_v45 = vmul.f32 %v1307_v34, %v485_v43  ;;  %v484_v46 = vmul.f32 %v1309_v39, %v482_v44 }
 0x153   : > { %v489_v47 = vadd.f32 -0.28449672, %v487_v45  ;;  %v486_v48 = vadd.f32 1.4214138, %v484_v46 }
 0x155   : > { %v491_v49 = vmul.f32 %v1307_v34, %v489_v47  ;;  %v488_v50 = vmul.f32 %v1309_v39, %v486_v48 }
 0x157   : > { %v493_v51 = vadd.f32 0.2548296, %v491_v49  ;;  %v490_v52 = vadd.f32 -0.28449672, %v488_v50 }
 0x159   : > { %v495_v53 = vmul.f32 %v1307_v34, %v493_v51  ;;  %v492_v54 = vmul.f32 %v1309_v39, %v490_v52 }
 0x15b   : > { %v505_v56 = vmul.f32 %v1311_v55, %v495_v53  ;;  %v494_v57 = vadd.f32 0.2548296, %v492_v54 }
 0x15d   : > { %v507_v58 = vsub.f32 1.0, %v505_v56  ;;  %v496_v59 = vmul.f32 %v1309_v39, %v494_v57 }
 0x15f   : > { %v511_v61 = vsub.f32 0.0, %v507_v58  ;;  %v506_v62 = vmul.f32 %v1313_v60, %v496_v59 }
 0x161   : > { %v513_v63 = vsel %vm509_vm2, %v511_v61, %v507_v58  ;;  %v508_v0 = vsub.f32 1.0, %v506_v62 }
 0x162   : > { %v515_v3 = vadd.f32 1.0, %v513_v63 }
 0x163   : > { %v512_v2 = vsub.f32 0.0, %v508_v0 }
 0x164   : > { %v517_v8 = vmul.f32 %v515_v3, %v467_v5 }
 0x165   : > { %v514_v4 = vsel %vm510_vm3, %v512_v2, %v508_v0 }
 0x166   : > { %v516_v7 = vadd.f32 1.0, %v514_v4 }
 0x168   : > { %v518_v9 = vmul.f32 %v516_v7, %v468_v6 }
 0x16a   : > { %v519_v10 = vpack.c.bf16 %v518_v9, %v517_v8 }
 0x16c   : > { %1128 = vmatmul.mubr.bf16.vlgmr.msra.gmra.mxu1 %v519_v10 }
 0x22c   : > { %v625_v20 = vpop.f32.mrf.mxu1 }
 0x22d   : > { %v626_v21 = vadd.f32 %v1041_v19, %v625_v20 }
 0x22e   : > { %v1129_v22 = vpop.f32.mrf.mxu1 }
 0x22f   : > { %v634_v23 = vmul.f32 0.70710677, %v626_v21  ;;  %v632_v7 = vmul.f32 0.5, %v626_v21 }
 0x230   : > { %v628_v24 = vpop.f32.mrf.mxu1 }
 0x231   : > { %v636_v25 = vand.u32 2147483647, %v634_v23  ;;  %v629_v26 = vadd.f32 %v1041_v19, %v628_v24  ;;  %vm674_vm4 = vcmp.lt.f32.partialorder %v634_v23, 0.0 }
 0x232   : > { %v1130_v27 = vpop.f32.mrf.mxu1 }
 0x233   : > { %v638_v28 = vmul.f32 0.3275911, %v636_v25  ;;  %v635_v29 = vmul.f32 0.70710677, %v629_v26  ;;  %v662_v33 = vsub.f32 0.0, %v636_v25  ;;  %v633_v8 = vmul.f32 0.5, %v629_v26 }
 0x235   : > { %v640_v1 = vadd.f32 1.0, %v638_v28  ;;  %v637_v30 = vand.u32 2147483647, %v635_v29  ;;  %v664_v34 = vmul.f32 %v662_v33, %v636_v25  ;;  %vm675_vm5 = vcmp.lt.f32.partialorder %v635_v29, 0.0 }
 0x237   : > { %1314 = vrcp.f32 %v640_v1  ;;  %v639_v31 = vmul.f32 0.3275911, %v637_v30  ;;  %v663_v35 = vsub.f32 0.0, %v637_v30  ;;  %v666_v38 = vmul.f32 1.442695, %v664_v34 }
 0x239   : > { %v641_v32 = vadd.f32 1.0, %v639_v31  ;;  %v665_v39 = vmul.f32 %v663_v35, %v637_v30 }
 0x23b   : > { %1316 = vrcp.f32 %v641_v32  ;;  %v668_v44 = vmul.f32 1.442695, %v665_v39 }
 0x23c   : > { %1318 = vpow2.f32 %v666_v38 }
 0x23d   : > { %1320 = vpow2.f32 %v668_v44 }
 0x244   : > { %v1315_v36 = vpop.eup %1314 }
 0x245   : > { %v644_v37 = vmul.f32 1.0614054, %v1315_v36 }
 0x247   : > { %v646_v40 = vadd.f32 -1.4531521, %v644_v37 }
 0x248   : > { %v1317_v41 = vpop.eup %1316 }
 0x249   : > { %v648_v42 = vmul.f32 %v1315_v36, %v646_v40  ;;  %v645_v43 = vmul.f32 1.0614054, %v1317_v41  ;;  %v1319_v57 = vpop.eup %1318 }
 0x24a   : > { %v1321_v62 = vpop.eup %1320 }
 0x24b   : > { %v650_v45 = vadd.f32 1.4214138, %v648_v42  ;;  %v647_v46 = vadd.f32 -1.4531521, %v645_v43 }
 0x24d   : > { %v652_v47 = vmul.f32 %v1315_v36, %v650_v45  ;;  %v649_v48 = vmul.f32 %v1317_v41, %v647_v46 }
 0x24f   : > { %v654_v49 = vadd.f32 -0.28449672, %v652_v47  ;;  %v651_v50 = vadd.f32 1.4214138, %v649_v48 }
 0x251   : > { %v656_v51 = vmul.f32 %v1315_v36, %v654_v49  ;;  %v653_v52 = vmul.f32 %v1317_v41, %v651_v50 }
 0x253   : > { %v658_v53 = vadd.f32 0.2548296, %v656_v51  ;;  %v655_v54 = vadd.f32 -0.28449672, %v653_v52 }
 0x255   : > { %v660_v55 = vmul.f32 %v1315_v36, %v658_v53  ;;  %v657_v56 = vmul.f32 %v1317_v41, %v655_v54 }
 0x257   : > { %v670_v58 = vmul.f32 %v1319_v57, %v660_v55  ;;  %v659_v59 = vadd.f32 0.2548296, %v657_v56 }
 0x259   : > { %v672_v60 = vsub.f32 1.0, %v670_v58  ;;  %v661_v61 = vmul.f32 %v1317_v41, %v659_v59 }
 0x25b   : > { %v676_v63 = vsub.f32 0.0, %v672_v60  ;;  %v671_v0 = vmul.f32 %v1321_v62, %v661_v61 }
 0x25d   : > { %v678_v2 = vsel %vm674_vm4, %v676_v63, %v672_v60  ;;  %v673_v3 = vsub.f32 1.0, %v671_v0 }
 0x25e   : > { %v680_v5 = vadd.f32 1.0, %v678_v2 }
 0x25f   : > { %v677_v4 = vsub.f32 0.0, %v673_v3 }
 0x260   : > { %v682_v10 = vmul.f32 %v680_v5, %v632_v7 }
 0x261   : > { %v679_v6 = vsel %vm675_vm5, %v677_v4, %v673_v3 }
 0x262   : > { %v681_v9 = vadd.f32 1.0, %v679_v6 }
 0x264   : > { %v683_v11 = vmul.f32 %v681_v9, %v633_v8 }
 0x266   : > { %v684_v12 = vpack.c.bf16 %v683_v11, %v682_v10 }
 0x268   : > { %1148 = vmatmul.mubr.bf16.vlgmr.msra.gmra.mxu0 %v684_v12 }
 0x328   : > { %v790_v14 = vpop.f32.mrf.mxu0 }
 0x329   : > { %v791_v15 = vadd.f32 %v1050_v13, %v790_v14 }
 0x32a   : > { %v1149_v16 = vpop.f32.mrf.mxu0 }
 0x32b   : > { %v797_v17 = vmul.f32 %v791_v15, %v791_v15 }
 0x32c   : > { %v793_v18 = vpop.f32.mrf.mxu0 }
 0x32d   : > { %v794_v19 = vadd.f32 %v1050_v13, %v793_v18  ;;  %v799_v20 = vsel %vm422_vm1, %v797_v17, 0.0 }
 0x32e   : > { %800 = vadd.xlane.f32.xlu0 %v799_v20  ;;  %v1150_v21 = vpop.f32.mrf.mxu0 }
 0x32f   : > { %v798_v22 = vmul.f32 %v794_v19, %v794_v19 }
 0x331   : > { %v802_v23 = vsel %vm422_vm1, %v798_v22, 0.0 }
 0x332   : > { %803 = vadd.xlane.f32.xlu0 %v802_v23 }
 0x3b7   : > { %v801_v24 = vpop.xlane.xlu0 %800 }
 0x3b8   : > { %v805_v25 = vmax.f32 %v801_v24, 1e-24 }
 0x3ba   : > { %1322 = vrsqrt.f32 %v805_v25 }
 0x3bb   : > { %v804_v26 = vpop.xlane.xlu0 %803 }
 0x3bc   : > { %v806_v27 = vmax.f32 %v804_v26, 1e-24 }
 0x3be   : > { %1324 = vrsqrt.f32 %v806_v27 }
 0x3c7   : > { %v1323_v28 = vpop.eup %1322 }
 0x3c8   : > { %v809_v29 = vmul.f32 %v1323_v28, %v791_v15 }
 0x3ca   : > { %811 = vst.msk [vmem:[#allocation2] sm:$0xff] %vm422_vm1, %v809_v29 }
 0x3cb   : > { %v1325_v1 = vpop.eup %1324 }
 0x3cc   : > { %v810_v30 = vmul.f32 %v1325_v1, %v794_v19 }
 0x3ce   : > { %812 = vst.msk [vmem:[#allocation2 + $0x8] sm:$0xff] %vm422_vm1, %v810_v30 }
 0x3cf PF: > { %v1326_v31 = vld [vmem:[%s1726_s6 + $0x18] sm:$0xff]   ;;  %v1517_v32 = vmov 0.0   ;;  %v1327_v33 = vld [vmem:[%s1726_s6 + $0x10] sm:$0xff]   ;;  %vm1518_vm6 = vmmov 0   ;;  %v1328_v34 = vld [vmem:[%s1726_s6 + $0x8] sm:$0xff]   ;;  %vm848_vm7 = vcmask 523264  }
 0x3d0   : > { %1151 = vmatprep.subr.bf16.mxu0 %v1517_v32  ;;  %1159 = vmatprep.mubr.msk.bf16.mxu0 %vm1518_vm6, %v1517_v32  ;;  %v1329_v35 = vld [vmem:[%s1726_s6] sm:$0xff]   ;;  %s1961_s22 = sld [smem:[#allocation15_spill]]  ;;  %s1070_s1 = sshll.u32 %s1496_s12, 2 }
 0x3d1   : > { %1152 = vmatpush3.bf16.msra.mxu0 %v1326_v31  ;;  %v813_v36 = vld [vmem:[#allocation2] sm:$0xff]  ;;  %s908_s23 = sadd.s32 %s1492_s11, %s1070_s1  ;;  %s911_s26 = sshll.u32 %s1739_s24, 4  ;;  %s1843_s26 = int_to_ptr.vmem [resolvable:$true] %s911_s26 }
 0x3d2   : > { %1153 = vmatprep.subr.bf16.mxu0 %v1517_v32  ;;  %s1067_s15 = sshll.u32 %s908_s23, 7  ;;  %s1962_s5 = sld [smem:[#allocation22_spill]] }
 0x3d3   : > { %s1848_s11 = scalar_lea.sflag [#allocation5], %s365_s4  ;;  %s1384_s12 = scalar_lea.vmem %s1843_s26, 256 }
 0x3d4   : > { %p1385_p10 = scmp.ne.s32.totalorder %s1843_s26, %s1384_s12  ;;  %s1519_s19 = smov [#allocation8]  }
 0x3d5   : > { %1154 = vmatpush3.bf16.msra.mxu0 %v1327_v33  ;;  %v814_v37 = vld [vmem:[#allocation2 + $0x8] sm:$0xff]  ;;  %s1388_s25 = sshll.u32 %s1519_s19, 4  ;;  %s1389_s25 = int_to_ptr.vmem [resolvable:$false] %s1388_s25 }
 0x3d6   : > { %1155 = vmatprep.subr.bf16.mxu0 %v1517_v32  ;;  %v815_v38 = vpack.c.bf16 %v814_v37, %v813_v36  ;;  %p1963_p12 = scmp.ne.s32.totalorder %s1961_s22, 0  ;;  %s1390_s20 = scalar_lea.vmem %s1389_s25, 512 }
 0x3d7   : > { %p1391_p2 = scmp.lt.s32.totalorder %s1843_s26, %s1389_s25  ;;  %p1392_p5 = scmp.lt.s32.totalorder %s1390_s20, %s1384_s12 }
 0x3d8   : > { %s1841_s6 = scalar_lea.hbm %s1962_s5, %s1067_s15  ;;  %p1386_p0 = pnand %p1385_p10, %p1963_p12 }
 0x3d9   : > { %1156 = vmatpush3.bf16.msra.mxu0 %v1328_v34  ;;  %p1393_p8 = por %p1392_p5, %p1391_p2 }
 0x3da   : > { %1157 = vmatprep.subr.bf16.mxu0 %v1517_v32  ;;  %p1387_p1 = pneg %p1386_p0 }
 0x3dc   : > { %p1394_p9 = pnand %p1393_p8, %p1387_p1 }
 0x3dd   : > { %1158 = vmatpush3.bf16.msra.mxu0 %v1329_v35 }
 0x3e0   : > { %1160 = vmatmul.mubr.msk.bf16.vlgmr.msra.gmra.mxu0 %vm848_vm7, %v815_v38 }
 0x4a0   : > { %v886_v39 = vpop.f32.mrf.mxu0 }
 0x4a1   : > { %893 = vst [vmem:[%s1739_s24] sm:$0xff] %v886_v39 }
 0x4a2   : > { %v1161_v40 = vpop.f32.mrf.mxu0 }
 0x4a4   : > { %v889_v41 = vpop.f32.mrf.mxu0 }
 0x4a5   : > { %894 = vst [vmem:[%s1739_s24 + $0x8] sm:$0xff] %v889_v41 }
 0x4a6   : > { %v1162_v42 = vpop.f32.mrf.mxu0 }
 0x4a7   : > { %1397 = shalt.err (!%p1394_p9)
}
 0x4a8   : > { %s1398_s4 = scalar_lea.hbm %s1841_s6, 256  ;;  %s1402_s8 = scalar_lea.hbm %s1962_s5, 1024 }
 0x4a9   : > { %p1399_p11 = scmp.ne.s32.totalorder %s1841_s6, %s1398_s4  ;;  %p1403_p7 = scmp.lt.s32.totalorder %s1841_s6, %s1962_s5 }
 0x4aa   : > { %p1404_p3 = scmp.lt.s32.totalorder %s1402_s8, %s1398_s4 }
 0x4ab   : > { %p1400_p13 = pnand %p1399_p11, %p1963_p12 }
 0x4ac   : > { %p1405_p6 = por %p1404_p3, %p1403_p7 }
 0x4ad   : > { %p1401_p4 = pneg %p1400_p13 }
 0x4af   : > { %p1406_p10 = pnand %p1405_p6, %p1401_p4 }
 0x4b1   : > { %1409 = shalt.err (!%p1406_p10)
}
 0x4b2   : > { %s1520_s15 = smov 128   ;;  %s1521_s13 = smov 256  }
 0x4b3   : > { %s1522_s16 = smov 8  }
 0x4b4   : > { %1169 = dma.vmem_to_hbm [thread:$0]  (%p1963_p12), %s1843_s26, 256, %s1841_s6, %s1848_s11, %s1520_s15, %s1521_s13, %s1522_s16  }
 0x4b5 PF: > { %s1964_s12 = sld [smem:[#allocation14_spill]] }
 0x4b6   : > { %s1965_s19 = sld [smem:[#allocation12_spill]] }
 0x4b7   : > { %s1966_s25 = sld [smem:[#allocation16_spill]] }
 0x4bb   : > { %p1186_p0 = scmp.ge.s32.totalorder %s1964_s12, 2 }
 0x4bc   : > { %s926_s20 = sand.u32 1, %s1965_s19  }
 0x4bd   : > { %p1967_p1 = scmp.ne.s32.totalorder %s1966_s25, 0  ;;  %s927_s4 = scalar_lea.sflag [#allocation5], %s926_s20 }
 0x4bf   : > { %p1180_p2 = pnand %p1186_p0, %p1967_p1 }
 0x4c1   : > { %p1181_p5 = pneg %p1180_p2 }
 0x4c3   : > { %1463 = dma.done.wait (%p1181_p5), %s927_s4, 256  }
 0x4c4   : > { %1465 = vsyncadd (%p1181_p5), %s927_s4, 4294967040  ;;  %s25_s15 = sadd.s32 1, %s1964_s12   ;;  %s1968_s22 = smov %s1700_s30 }
 0x4c5   : > { %p22_p8 = scmp.ge.s32.totalorder %s25_s15, 6   ;;  %s1969_s11 = sld [smem:[#allocation13_spill]] }
 0x4c6   : > { %s1970_s13 = sld [smem:[#allocation17_spill]]  ;;  %s1971_s26 = smov %s1985_s27 }
 0x4c7   : > { %s1972_s27 = smov %s1472_s28  ;;  %s1973_s28 = smov %s1476_s29 }
 0x4c8   : > { %s1974_s29 = smov %s1717_s21  ;;  %s1975_s30 = smov %s1484_s9 }
 0x4c9   : > { %s1976_s9 = smov %s1488_s10  ;;  %s1977_s10 = smov %s1968_s22 }
 0x4ca   : > { %s1978_s12 = smov %s1504_s14  ;;  %s1979_s14 = smov %s1971_s26 }
 0x4cb   :  { %24 = sbr.rel (!%p22_p8) target bundleno = 16 (0x10), region = 109 }
 0x4d0   :  { %932 = vsyncpa [#allocation4], 1 }
 0x4d1   :  { %934 = vsyncpa [#allocation4 + $0x1], 1 }
 0x4d2   :  { %935 = vsyncpa [#allocation7], 1 }
 0x4d3   :  { %937 = vsyncpa [#allocation7 + $0x1], 1 }
 0x4d4   :  { %938 = vsyncpa [#allocation5], 1 }
 0x4d5   :  { %940 = vsyncpa [#allocation5 + $0x1], 1 }

</bundles_post_ra>
